<compile_context>
chip_gen: v6e
topology: v6e:2x2x1
jax: 0.10.0
libtpu: 0.0.40
codegen_flags: <defaults>
</compile_context>

<pallas_src>
import functools

import jax
import jax.numpy as jnp
from jax import lax
from jax.experimental import pallas as pl
from jax.experimental.pallas import tpu as pltpu


def _round_up(x: int, m: int) -> int:
    return ((x + m - 1) // m) * m


def _linear_kernel(x_ref, w_ref, b_ref, o_ref):
    # x_ref: (TB, TK)          input tile
    # w_ref: (TN, TK)          weight tile in PyTorch [out, in] layout
    # b_ref: (1, TN)  f32      bias tile
    # o_ref: (TB, TN) f32      output tile, K-resident (index_map ignores k)
    k = pl.program_id(2)

    # x @ W.T for this tile: contract last axis of both operands on the MXU.
    partial = lax.dot_general(
        x_ref[...], w_ref[...],
        dimension_numbers=(((1,), (1,)), ((), ())),
        preferred_element_type=jnp.float32,
    )

    @pl.when(k == 0)
    def _():
        # First (or only) K step: fused dot + bias, no separate init phase.
        o_ref[...] = partial + b_ref[...]

    @pl.when(k > 0)
    def _():
        o_ref[...] += partial


def _lane_tile(dim: int, cap: int) -> int:
    # Lane-dim tile: minimal 128 tile for small dims, 256-aligned otherwise
    # (keeps the v6e/v7x 2x256x256 MXU fully fed). cap must be a multiple
    # of 256.
    if dim <= 128:
        return 128
    return min(cap, _round_up(dim, 256))


@functools.partial(
    jax.jit, static_argnames=("tile_b", "tile_n", "tile_k", "compute_dtype"))
def layer_forward(x, weight, bias, *, tile_b=1024, tile_n=1024, tile_k=512,
                  compute_dtype=None):
    """Pallas equivalent of Layer.forward with default (identity) extras.

    x:      [B, in_features]              float32
    weight: [out_features, in_features]   (PyTorch nn.Linear layout, untouched)
    bias:   [out_features]
    returns [B, out_features]             float32
    """
    B, IN = x.shape
    OUT, IN_w = weight.shape
    assert IN == IN_w

    # Optional reduced-precision MXU inputs; accumulation stays f32.
    if compute_dtype is not None:
        x = x.astype(compute_dtype)
        weight = weight.astype(compute_dtype)

    # ---- tile selection ------------------------------------------------
    tb = min(tile_b, _round_up(B, 8))          # sublane-aligned batch tile
    tn = _lane_tile(OUT, tile_n)               # lane-aligned output tile
    tk = _lane_tile(IN, tile_k)                # lane-aligned reduction tile

    Bp = _round_up(B, tb)
    Np = _round_up(OUT, tn)
    Kp = _round_up(IN, tk)

    # v7x megacore: make sure at least one 'parallel' axis has >= 2 blocks
    # for skinny-batch shapes (otherwise one TensorCore idles).
    if Bp // tb == 1 and Np // tn == 1 and Np >= 256:
        tn = Np // 2            # Np is a multiple of 256 -> tn stays 128-aligned

    grid = (Bp // tb, Np // tn, Kp // tk)

    # ---- padding (fused under jit; zero K-padding is reduction-neutral) --
    x_p = x if (Bp == B and Kp == IN) else jnp.pad(
        x, ((0, Bp - B), (0, Kp - IN)))
    w_p = weight if (Np == OUT and Kp == IN) else jnp.pad(
        weight, ((0, Np - OUT), (0, Kp - IN)))
    b_p = bias if Np == OUT else jnp.pad(bias, (0, Np - OUT))
    b2 = b_p.reshape(1, Np).astype(jnp.float32)

    # ---- cost / VMEM bookkeeping ----------------------------------------
    in_itemsize = jnp.dtype(x_p.dtype).itemsize
    gb, gn, _ = grid
    cost = pl.CostEstimate(
        flops=2 * Bp * Kp * Np,
        transcendentals=0,
        bytes_accessed=(Bp * Kp * gn + Np * Kp * gb) * in_itemsize
        + (Bp * Np + Np * gb) * 4,
    )

    # Double-buffered in/out tiles; cap at 48 MiB so it also fits v7x VMEM.
    tile_bytes = in_itemsize * (tb * tk + tn * tk) + 4 * (tb * tn + tn)
    vmem_limit = int(min(max(2 * tile_bytes + (4 << 20), 32 << 20), 48 << 20))

    out = pl.pallas_call(
        _linear_kernel,
        out_shape=jax.ShapeDtypeStruct((Bp, Np), jnp.float32),
        grid=grid,
        in_specs=[
            pl.BlockSpec((tb, tk), lambda i, j, k: (i, k)),   # x tile
            pl.BlockSpec((tn, tk), lambda i, j, k: (j, k)),   # W tile [out,in]
            pl.BlockSpec((1, tn), lambda i, j, k: (0, j)),    # bias tile
        ],
        out_specs=pl.BlockSpec((tb, tn), lambda i, j, k: (i, j)),
        compiler_params=pltpu.CompilerParams(
            dimension_semantics=("parallel", "parallel", "arbitrary"),
            vmem_limit_bytes=vmem_limit,
        ),
        cost_estimate=cost,
    )(x_p, w_p, b2)

    if Bp == B and Np == OUT:
        return out
    return out[:B, :OUT]


def layer_forward_ref(x, weight, bias):
    # Pure-JAX reference (identity in_activation/dropout/norm/out_activation).
    return x @ weight.T + bias


if __name__ == "__main__":
    key = jax.random.PRNGKey(0)
    k_x, k_w, k_b = jax.random.split(key, 3)

    B, IN_FEATURES, OUT_FEATURES = 8, 32, 32

    x = jax.random.normal(k_x, (B, IN_FEATURES), dtype=jnp.float32)
    # Deterministic synthetic parameters (nn.Linear shapes: [out, in], [out]).
    bound = 1.0 / (IN_FEATURES ** 0.5)
    weight = jax.random.uniform(
        k_w, (OUT_FEATURES, IN_FEATURES), minval=-bound, maxval=bound,
        dtype=jnp.float32)
    bias = jax.random.uniform(
        k_b, (OUT_FEATURES,), minval=-bound, maxval=bound, dtype=jnp.float32)

    y = layer_forward(x, weight, bias)
    y = jax.block_until_ready(y)

    y_ref = layer_forward_ref(x, weight, bias)
    assert y.shape == (B, OUT_FEATURES)
    assert jnp.allclose(y, y_ref, atol=1e-5, rtol=1e-5)

    print("KERNEL_OK")
</pallas_src>

<mosaic_0001>
module attributes {stable_mosaic.version = 11 : i64} {
  func.func @_linear_kernel(%arg0: i32, %arg1: i32, %arg2: i32, %arg3: memref<8x128xf32, #tpu.memory_space<vmem>>, %arg4: memref<128x128xf32, #tpu.memory_space<vmem>>, %arg5: memref<1x128xf32, #tpu.memory_space<vmem>>, %arg6: memref<8x128xf32, #tpu.memory_space<vmem>>) attributes {dimension_semantics = [#tpu.dimension_semantics<parallel>, #tpu.dimension_semantics<parallel>, #tpu.dimension_semantics<arbitrary>], iteration_bounds = array<i64: 1, 1, 1>, scalar_prefetch = 0 : i64, scratch_operands = 0 : i64, tpu.core_type = #tpu.core_type<tc>, window_params = [{transform_indices = @transform_0, window_bounds = array<i64: 8, 128>}, {transform_indices = @transform_1, window_bounds = array<i64: 128, 128>}, {transform_indices = @transform_2, window_bounds = array<i64: 1, 128>}, {transform_indices = @transform_3, window_bounds = array<i64: 8, 128>}]} {
    %c0 = arith.constant 0 : index
    %c0_0 = arith.constant 0 : index
    %0 = vector.load %arg3[%c0, %c0_0] : memref<8x128xf32, #tpu.memory_space<vmem>>, vector<8x128xf32>
    %c0_1 = arith.constant 0 : index
    %c0_2 = arith.constant 0 : index
    %1 = vector.load %arg4[%c0_1, %c0_2] : memref<128x128xf32, #tpu.memory_space<vmem>>, vector<128x128xf32>
    %cst = arith.constant dense<0.000000e+00> : vector<8x128xf32>
    %2 = tpu.matmul %0, %1, %cst {dimension_numbers = #tpu.dot_dimension_numbers<[1], [1], [0], [0], [0, 0, 1, 0], [], []>} : vector<8x128xf32>, vector<128x128xf32>, vector<8x128xf32> -> vector<8x128xf32>
    %c0_i32 = arith.constant 0 : i32
    %3 = arith.cmpi eq, %arg2, %c0_i32 : i32
    %4 = arith.extui %3 : i1 to i32
    %c0_i32_3 = arith.constant 0 : i32
    %5 = arith.cmpi ne, %4, %c0_i32_3 : i32
    scf.if %5 {
      %c0_6 = arith.constant 0 : index
      %c0_7 = arith.constant 0 : index
      %9 = vector.load %arg5[%c0_6, %c0_7] : memref<1x128xf32, #tpu.memory_space<vmem>>, vector<1x128xf32>
      %10 = vector.broadcast %9 : vector<1x128xf32> to vector<8x128xf32>
      %11 = arith.addf %2, %10 : vector<8x128xf32>
      %c0_8 = arith.constant 0 : index
      %c0_9 = arith.constant 0 : index
      %12 = vector.load %arg6[%c0_8, %c0_9] : memref<8x128xf32, #tpu.memory_space<vmem>>, vector<8x128xf32>
      tpu.vector_store %arg6[%c0_8, %c0_9], %11 {strides = array<i32>} : memref<8x128xf32, #tpu.memory_space<vmem>>, vector<8x128xf32>,
    } else {
    }
    %c0_i32_4 = arith.constant 0 : i32
    %6 = arith.cmpi sgt, %arg2, %c0_i32_4 : i32
    %7 = arith.extui %6 : i1 to i32
    %c0_i32_5 = arith.constant 0 : i32
    %8 = arith.cmpi ne, %7, %c0_i32_5 : i32
    scf.if %8 {
      %c0_6 = arith.constant 0 : index
      %c0_7 = arith.constant 0 : index
      %9 = vector.load %arg6[%c0_6, %c0_7] : memref<8x128xf32, #tpu.memory_space<vmem>>, vector<8x128xf32>
      %10 = arith.addf %9, %2 : vector<8x128xf32>
      %c0_8 = arith.constant 0 : index
      %c0_9 = arith.constant 0 : index
      %11 = vector.load %arg6[%c0_8, %c0_9] : memref<8x128xf32, #tpu.memory_space<vmem>>, vector<8x128xf32>
      tpu.vector_store %arg6[%c0_8, %c0_9], %10 {strides = array<i32>} : memref<8x128xf32, #tpu.memory_space<vmem>>, vector<8x128xf32>,
    } else {
    }
    return
  }
  func.func @transform_0(%arg0: i32, %arg1: i32, %arg2: i32) -> (i32, i32) {
    %c0_i32 = arith.constant 0 : i32
    return %arg0, %arg2 : i32, i32
  }
  func.func @transform_1(%arg0: i32, %arg1: i32, %arg2: i32) -> (i32, i32) {
    %c0_i32 = arith.constant 0 : i32
    return %arg1, %arg2 : i32, i32
  }
  func.func @transform_2(%arg0: i32, %arg1: i32, %arg2: i32) -> (i32, i32) {
    %c0_i32 = arith.constant 0 : i32
    %c0_i32_0 = arith.constant 0 : i32
    return %c0_i32, %arg1 : i32, i32
  }
  func.func @transform_3(%arg0: i32, %arg1: i32, %arg2: i32) -> (i32, i32) {
    %c0_i32 = arith.constant 0 : i32
    return %arg0, %arg1 : i32, i32
  }
}

</mosaic_0001>

<bundles_post_ra>
// kernel: layer_forward.1
= control target key start
LH: loop header
LB: loop body
LE: loop exit
PB: predicated region body
PF: predicated region fallthrough
CT: control target
= control target key end

     0   :  { %v214_v1 = vmov 0.0   ;;  %vm215_vm0 = vmmov 0   ;;  %s294_s0 = inlined_call_operand.vmem [shape: f32[8,128], index: 0, kind: input, shape index: {}]   ;;  %s295_s1 = inlined_call_operand.vmem [shape: f32[128,128], index: 1, kind: input, shape index: {}]   ;;  %s296_s2 = inlined_call_operand.vmem [shape: f32[1,128], index: 2, kind: input, shape index: {}]   ;;  %s297_s3 = inlined_call_operand.hbm [shape: f32[8,128], index: 3, kind: output, shape index: {}]  }
   0x1   :  { %v31_v0 = vld [vmem:[%s295_s1 + $0x78] sm:$0xff]  ;;  %154 = vmatprep.subr.mxu0 %v214_v1  ;;  %186 = vmatprep.mubr.msk.f32.mxu0 %vm215_vm0, %v214_v1  ;;  %v30_v2 = vld [vmem:[%s295_s1 + $0x70] sm:$0xff] }
   0x2   :  { %155 = vmatpush3.xpose.msra.mxu0 %v31_v0 }
   0x3   :  { %156 = vmatprep.subr.mxu0 %v214_v1 }
   0x4   :  { %8 = vsyncpa [#allocation3], 0  ;;  %v29_v3 = vld [vmem:[%s295_s1 + $0x68] sm:$0xff]  ;;  %v28_v4 = vld [vmem:[%s295_s1 + $0x60] sm:$0xff]  ;;  %s216_s21 = smov [#allocation2]  }
   0x5   :  { %v27_v5 = vld [vmem:[%s295_s1 + $0x58] sm:$0xff]  ;;  %v26_v6 = vld [vmem:[%s295_s1 + $0x50] sm:$0xff]  ;;  %v25_v7 = vld [vmem:[%s295_s1 + $0x48] sm:$0xff]  ;;  %s128_s22 = sshll.u32 %s216_s21, 4  ;;  %s129_s22 = int_to_ptr.vmem [resolvable:$true] %s128_s22 }
   0x6   :  { %157 = vmatpush3.xpose.msra.mxu0 %v30_v2  ;;  %v24_v8 = vld [vmem:[%s295_s1 + $0x40] sm:$0xff]  ;;  %v23_v9 = vld [vmem:[%s295_s1 + $0x38] sm:$0xff]  ;;  %v22_v10 = vld [vmem:[%s295_s1 + $0x30] sm:$0xff]  ;;  %s192_s23 = scalar_lea.vmem %s129_s22, 128  ;;  %p197_p1 = scmp.lt.s32.totalorder %s129_s22, %s129_s22 }
   0x7   :  { %158 = vmatprep.subr.mxu0 %v214_v1  ;;  %v21_v11 = vld [vmem:[%s295_s1 + $0x28] sm:$0xff]  ;;  %v20_v12 = vld [vmem:[%s295_s1 + $0x20] sm:$0xff]  ;;  %v19_v13 = vld [vmem:[%s295_s1 + $0x18] sm:$0xff]  ;;  %p193_p0 = scmp.ne.s32.totalorder %s129_s22, %s192_s23  ;;  %p198_p2 = scmp.lt.s32.totalorder %s192_s23, %s192_s23 }
   0x8   :  { %v18_v14 = vld [vmem:[%s295_s1 + $0x10] sm:$0xff]  ;;  %v17_v15 = vld [vmem:[%s295_s1 + $0x8] sm:$0xff]  ;;  %v16_v16 = vld [vmem:[%s295_s1] sm:$0xff] }
   0x9   :  { %v15_v17 = vld [vmem:[%s294_s0] sm:$0xff]  ;;  %p199_p3 = por %p198_p2, %p197_p1 }
   0xa   :  { %159 = vmatpush3.xpose.msra.mxu0 %v29_v3  ;;  %v136_v18 = vld [vmem:[%s296_s2] ss:$0 sm:$0xff] }
   0xb   :  { %160 = vmatprep.subr.mxu0 %v214_v1  ;;  %p200_p4 = pnand %p199_p3, %p193_p0 }
   0xe   :  { %161 = vmatpush3.xpose.msra.mxu0 %v28_v4 }
   0xf   :  { %162 = vmatprep.subr.mxu0 %v214_v1 }
  0x12   :  { %163 = vmatpush3.xpose.msra.mxu0 %v27_v5 }
  0x13   :  { %164 = vmatprep.subr.mxu0 %v214_v1 }
  0x16   :  { %165 = vmatpush3.xpose.msra.mxu0 %v26_v6 }
  0x17   :  { %166 = vmatprep.subr.mxu0 %v214_v1 }
  0x1a   :  { %167 = vmatpush3.xpose.msra.mxu0 %v25_v7 }
  0x1b   :  { %168 = vmatprep.subr.mxu0 %v214_v1 }
  0x1e   :  { %169 = vmatpush3.xpose.msra.mxu0 %v24_v8 }
  0x1f   :  { %170 = vmatprep.subr.mxu0 %v214_v1 }
  0x22   :  { %171 = vmatpush3.xpose.msra.mxu0 %v23_v9 }
  0x23   :  { %172 = vmatprep.subr.mxu0 %v214_v1 }
  0x26   :  { %173 = vmatpush3.xpose.msra.mxu0 %v22_v10 }
  0x27   :  { %174 = vmatprep.subr.mxu0 %v214_v1 }
  0x2a   :  { %175 = vmatpush3.xpose.msra.mxu0 %v21_v11 }
  0x2b   :  { %176 = vmatprep.subr.mxu0 %v214_v1 }
  0x2e   :  { %177 = vmatpush3.xpose.msra.mxu0 %v20_v12 }
  0x2f   :  { %178 = vmatprep.subr.mxu0 %v214_v1 }
  0x32   :  { %179 = vmatpush3.xpose.msra.mxu0 %v19_v13 }
  0x33   :  { %180 = vmatprep.subr.mxu0 %v214_v1 }
  0x36   :  { %181 = vmatpush3.xpose.msra.mxu0 %v18_v14 }
  0x37   :  { %182 = vmatprep.subr.mxu0 %v214_v1 }
  0x3a   :  { %183 = vmatpush3.xpose.msra.mxu0 %v17_v15 }
  0x3b   :  { %184 = vmatprep.subr.mxu0 %v214_v1 }
  0x3e   :  { %185 = vmatpush3.xpose.msra.mxu0 %v16_v16 }
  0x41   :  { %187 = vmatmul.mubr.f32.vlgmr.msra.gmra.mxu0 %v15_v17 }
 0x101   :  { %v98_v19 = vpop.f32.mrf.mxu0 }
 0x102   :  { %v113_v20 = vadd.f32 %v136_v18, %v98_v19 }
 0x103   :  { %v188_v21 = vpop.f32.mrf.mxu0 }
 0x104   :  { %114 = vst [vmem:[#allocation2] sm:$0xff] %v113_v20 }
 0x105   :  { %203 = shalt.err (!%p200_p4)
}
 0x106   :  { %131 = dma.vmem_to_hbm [thread:$0]  %s129_s22, 128, %s297_s3, [#allocation3]  }
 0x107   :  { %212 = dma.done.wait [#allocation3], 128  }
 0x108   :  { %213 = vsyncadd [#allocation3], 4294967168 }
 0x109   :  { %135 = vsyncpa [#allocation3], 1 }

</bundles_post_ra>
